<compile_context>
chip_gen: v7x
topology: tpu7x:2x2x1
jax: 0.10.0
libtpu: 0.0.40
codegen_flags: <defaults>
</compile_context>

<pallas_src>
import numpy as np
import jax
import jax.numpy as jnp
from jax.experimental import pallas as pl
from jax.experimental.pallas import tpu as pltpu

K_VOL = 27          # 3^3 kernel offsets
C_IN = 2
C_OUT = 16
KC = K_VOL * C_IN   # fused contraction dim = 54


def _round_up(x, m):
    return ((x + m - 1) // m) * m


def sparse_conv_kernel(w_ref, g_ref, o_ref):
    """One fused matmul per N-tile: out_T = W_T @ G_T_tile.

    w_ref: [C_OUT, KC]      bf16 (resident, loaded once)
    g_ref: [KC, TILE_N]     bf16 (streamed, lane-dense)
    o_ref: [C_OUT, TILE_N]  f32  (lane-dense, unmasked stores)
    """
    o_ref[...] = jnp.dot(
        w_ref[...], g_ref[...], preferred_element_type=jnp.float32
    ).astype(o_ref.dtype)


def sparse_conv_pallas(g_t, w_t, *, tile_n=32768):
    """g_t: [KC, N] gathered features (fused transposed layout, ideally bf16),
    w_t: [C_OUT, KC] fused conv weights.  Returns out [N, C_OUT] f32."""
    kc, n = g_t.shape
    c_out, kc2 = w_t.shape
    assert kc == KC and kc2 == KC and c_out == C_OUT

    # Lane-aligned tiling of N.  No jnp.pad (that would be a full extra HBM
    # read+write of G_T): the last grid block may be partial; OOB input columns
    # hold unspecified data but each output column depends only on its own G_T
    # column, and OOB output columns are never written back.
    tile_n = max(128, min(tile_n, _round_up(n, 128)))
    if n > 2 * 128 and pl.cdiv(n, tile_n) < 2:
        # Prefer >= 2 tiles so the "parallel" N axis can shard across the two
        # TensorCores on v7x.
        tile_n = _round_up(pl.cdiv(n, 2), 128)
    num_tiles = pl.cdiv(n, tile_n)

    # Explicit VMEM budget for the double-buffered tiles (re-derived per tile
    # size instead of relying on per-chip scoped defaults).
    g_tile_bytes = KC * tile_n * g_t.dtype.itemsize
    o_tile_bytes = C_OUT * tile_n * 4
    w_bytes = C_OUT * KC * w_t.dtype.itemsize
    vmem_needed = 2 * (g_tile_bytes + o_tile_bytes) + 2 * w_bytes
    vmem_limit = min(max(int(1.25 * vmem_needed) + (1 << 20), 16 << 20), 48 << 20)

    cost = pl.CostEstimate(
        flops=2 * C_OUT * KC * n,
        transcendentals=0,
        bytes_accessed=(g_t.size * g_t.dtype.itemsize
                        + C_OUT * n * 4
                        + w_t.size * w_t.dtype.itemsize),
    )

    out_t = pl.pallas_call(
        sparse_conv_kernel,
        out_shape=jax.ShapeDtypeStruct((C_OUT, n), jnp.float32),
        grid_spec=pltpu.PrefetchScalarGridSpec(
            num_scalar_prefetch=0,
            grid=(num_tiles,),
            in_specs=[
                # Tiny weight block, constant index_map -> fetched once, resident.
                pl.BlockSpec((C_OUT, KC), lambda i: (0, 0)),
                # Streamed gathered-feature tile, N on the lane axis.
                pl.BlockSpec((KC, tile_n), lambda i: (0, i)),
            ],
            out_specs=pl.BlockSpec((C_OUT, tile_n), lambda i: (0, i)),
        ),
        compiler_params=pltpu.CompilerParams(
            dimension_semantics=("parallel",),
            vmem_limit_bytes=vmem_limit,
        ),
        cost_estimate=cost,
    )(w_t, g_t)

    # Kernel emits channel-major [C_OUT, N] (lane-dense stores).  Transpose back
    # to MinkowskiEngine layout [N, C_OUT] outside the kernel (cheap XLA op); if
    # a downstream consumer can take channel-major, return out_t directly instead.
    return out_t.T


def build_kernel_map_gather(coords_np, feats_np):
    """Host-side glue: for every 3^3 offset, gather neighbor features.

    Returns G_T [KC, N] bf16 where row k*C_IN + c holds channel c of the neighbor
    at offset k (zero if no input exists at coord+offset).  Equivalent to
    MinkowskiEngine's kernel map for stride=1 (output coords == input coords).
    bf16 is emitted at the source so the dominant HBM stream is halved without an
    extra device-side cast pass.
    """
    # TODO(synk): the coordinate-hash neighbor lookup has no clean Pallas
    # equivalent; longer term this 27x-amplified dense gather should become an
    # on-device index-driven gather (scalar-prefetched int32/int16 neighbor
    # tables + raw [N, C_IN] features) to cut HBM traffic and drop the host loop.
    n = coords_np.shape[0]
    index = {tuple(int(v) for v in c): i for i, c in enumerate(coords_np)}
    offsets = [
        (dz, dy, dx)
        for dz in (-1, 0, 1)
        for dy in (-1, 0, 1)
        for dx in (-1, 0, 1)
    ]
    g_t = np.zeros((KC, n), dtype=np.float32)
    for k, (dz, dy, dx) in enumerate(offsets):
        for i, c in enumerate(coords_np):
            nb = (int(c[0]), int(c[1]) + dz, int(c[2]) + dy, int(c[3]) + dx)
            j = index.get(nb)
            if j is not None:
                g_t[k * C_IN:(k + 1) * C_IN, i] = feats_np[j]
    return jnp.asarray(g_t.astype(jnp.bfloat16))


if __name__ == "__main__":
    key = jax.random.PRNGKey(0)
    k_coords0, k_coords1, k_feats, k_w = jax.random.split(key, 4)

    # Small deterministic sparse tensor: batch=2, 8x8x8 grid, 32 pts/batch.
    batch_size, grid, pts_per_batch = 2, 8, 32
    n_points = batch_size * pts_per_batch
    coords_list = []
    for b, kk in enumerate([k_coords0, k_coords1]):
        flat = jax.random.choice(
            kk, grid ** 3, shape=(pts_per_batch,), replace=False
        )
        flat = np.asarray(flat)
        z, rem = flat // (grid * grid), flat % (grid * grid)
        y, x = rem // grid, rem % grid
        coords_list.append(
            np.stack([np.full_like(z, b), z, y, x], axis=1).astype(np.int32)
        )
    coords_np = np.concatenate(coords_list, axis=0)          # [N, 4]
    feats = jax.random.normal(k_feats, (n_points, C_IN), jnp.float32)
    feats_np = np.asarray(feats)

    # Conv weights shaped like MinkowskiConvolution.kernel: (K_VOL, C_IN, C_OUT);
    # default bias=False.
    weights = 0.1 * jax.random.normal(k_w, (K_VOL, C_IN, C_OUT), jnp.float32)

    # Host glue: kernel map + gather in the fused transposed bf16 layout [54, N].
    g_t = build_kernel_map_gather(coords_np, feats_np)
    # Fused transposed weights [C_OUT, 54]: W_T[o, k*C_IN + c] = weights[k, c, o].
    w_t = weights.reshape(KC, C_OUT).T.astype(jnp.bfloat16)

    out = sparse_conv_pallas(g_t, w_t)
    out = jax.block_until_ready(out)

    # Independent reference in plain JAX on the same bf16-rounded inputs
    # (per-offset einsum semantics), accumulated in f32.
    g3 = g_t.astype(jnp.float32).reshape(K_VOL, C_IN, n_points).transpose(0, 2, 1)
    w3 = w_t.astype(jnp.float32).T.reshape(K_VOL, C_IN, C_OUT)
    ref = jnp.einsum("kni,kio->no", g3, w3, precision=jax.lax.Precision.HIGHEST)
    assert out.shape == (n_points, C_OUT)
    np.testing.assert_allclose(np.asarray(out), np.asarray(ref), rtol=1e-3, atol=1e-3)

    print("KERNEL_OK")
</pallas_src>

<mosaic_0001>
module attributes {stable_mosaic.version = 11 : i64} {
  func.func @sparse_conv_kernel(%arg0: i32, %arg1: memref<16x54xbf16, #tpu.memory_space<vmem>>, %arg2: memref<54x128xbf16, #tpu.memory_space<vmem>>, %arg3: memref<16x128xf32, #tpu.memory_space<vmem>>) attributes {dimension_semantics = [#tpu.dimension_semantics<parallel>], iteration_bounds = array<i64: 1>, scalar_prefetch = 0 : i64, scratch_operands = 0 : i64, tpu.core_type = #tpu.core_type<tc>, window_params = [{pipeline_mode = #tpu.pipeline_mode<synchronous>, transform_indices = @transform_0, window_bounds = array<i64: 16, 54>}, {transform_indices = @transform_1, window_bounds = array<i64: 54, 128>}, {transform_indices = @transform_2, window_bounds = array<i64: 16, 128>}]} {
    %c0 = arith.constant 0 : index
    %c0_0 = arith.constant 0 : index
    %0 = vector.load %arg1[%c0, %c0_0] : memref<16x54xbf16, #tpu.memory_space<vmem>>, vector<16x54xbf16>
    %c0_1 = arith.constant 0 : index
    %c0_2 = arith.constant 0 : index
    %1 = vector.load %arg2[%c0_1, %c0_2] : memref<54x128xbf16, #tpu.memory_space<vmem>>, vector<54x128xbf16>
    %cst = arith.constant dense<0.000000e+00> : vector<16x128xf32>
    %2 = tpu.matmul %0, %1, %cst {dimension_numbers = #tpu.dot_dimension_numbers<[1], [0], [0], [1], [0, 0, 1, 1], [], []>} : vector<16x54xbf16>, vector<54x128xbf16>, vector<16x128xf32> -> vector<16x128xf32>
    %c0_3 = arith.constant 0 : index
    %c0_4 = arith.constant 0 : index
    %3 = vector.load %arg3[%c0_3, %c0_4] : memref<16x128xf32, #tpu.memory_space<vmem>>, vector<16x128xf32>
    tpu.vector_store %arg3[%c0_3, %c0_4], %2 {strides = array<i32>} : memref<16x128xf32, #tpu.memory_space<vmem>>, vector<16x128xf32>,
    return
  }
  func.func @transform_0(%arg0: i32) -> (i32, i32) {
    %c0_i32 = arith.constant 0 : i32
    %c0_i32_0 = arith.constant 0 : i32
    %c0_i32_1 = arith.constant 0 : i32
    return %c0_i32, %c0_i32_0 : i32, i32
  }
  func.func @transform_1(%arg0: i32) -> (i32, i32) {
    %c0_i32 = arith.constant 0 : i32
    %c0_i32_0 = arith.constant 0 : i32
    return %c0_i32, %arg0 : i32, i32
  }
  func.func @transform_2(%arg0: i32) -> (i32, i32) {
    %c0_i32 = arith.constant 0 : i32
    %c0_i32_0 = arith.constant 0 : i32
    return %c0_i32, %arg0 : i32, i32
  }
}

</mosaic_0001>

<bundles_post_ra>
// kernel: tpu_custom_call.1
= control target key start
LH: loop header
LB: loop body
LE: loop exit
PB: predicated region body
PF: predicated region fallthrough
CT: control target
= control target key end

     0   :  { %7 = vsyncpa [#allocation3], 0  ;;  %s314_s0 = inlined_call_operand.hbm [shape: bf16[16,54], index: 0, kind: input, shape index: {}]   ;;  %s315_s1 = inlined_call_operand.hbm [shape: bf16[54,64], index: 1, kind: input, shape index: {}]   ;;  %s316_s2 = inlined_call_operand.hbm [shape: f32[16,64], index: 2, kind: output, shape index: {}]  }
   0x1   :  { %8 = vsyncpa [#allocation6], 0 }
   0x2   :  { %9 = vsyncpa [#allocation4], 0  ;;  %s254_s9 = smov [#allocation2]   ;;  %s182_s13 = scalar_lea.hbm %s314_s0, 128 }
   0x3   :  { %s15_s10 = sshll.u32 %s254_s9, 4  ;;  %p183_p0 = scmp.ne.s32.totalorder %s314_s0, %s182_s13  ;;  %s16_s10 = int_to_ptr.vmem [resolvable:$true] %s15_s10 }
   0x4   :  { %p186_p1 = scmp.lt.u32.totalorder %s182_s13, %s314_s0 }
   0x6   :  { %p188_p2 = pnand %p186_p1, %p183_p0 }
   0x8   :  { %191 = shalt.err (!%p188_p2)
}
   0x9   :  { %s192_s18 = scalar_lea.vmem %s16_s10, 128  ;;  %p197_p4 = scmp.lt.s32.totalorder %s16_s10, %s16_s10 }
   0xa   :  { %p193_p3 = scmp.ne.s32.totalorder %s16_s10, %s192_s18  ;;  %p198_p5 = scmp.lt.s32.totalorder %s192_s18, %s192_s18 }
   0xc   :  { %p199_p6 = por %p198_p5, %p197_p4 }
   0xe   :  { %p200_p7 = pnand %p199_p6, %p193_p3 }
  0x10   :  { %203 = shalt.err (!%p200_p7)
}
  0x11   :  { %s255_s19 = smov 64   ;;  %s256_s20 = smov 4  }
  0x12   :  { %21 = dma.hbm_to_vmem [thread:$0]  %s314_s0, 128, %s16_s10, [#allocation3], %s255_s19, %s255_s19, %s256_s20  }
  0x13   :  { %s257_s23 = smov [#allocation5]   ;;  %s204_s27 = scalar_lea.hbm %s315_s1, 448 }
  0x14   :  { %s27_s24 = sshll.u32 %s257_s23, 4  ;;  %p205_p8 = scmp.ne.s32.totalorder %s315_s1, %s204_s27  ;;  %s28_s24 = int_to_ptr.vmem [resolvable:$true] %s27_s24 }
  0x15   :  { %p208_p9 = scmp.lt.u32.totalorder %s204_s27, %s315_s1 }
  0x17   :  { %p210_p10 = pnand %p208_p9, %p205_p8 }
  0x19   :  { %213 = shalt.err (!%p210_p10)
}
  0x1a   :  { %s214_s4 = scalar_lea.vmem %s28_s24, 448  ;;  %p219_p12 = scmp.lt.s32.totalorder %s28_s24, %s28_s24 }
  0x1b   :  { %p215_p11 = scmp.ne.s32.totalorder %s28_s24, %s214_s4  ;;  %p220_p13 = scmp.lt.s32.totalorder %s214_s4, %s214_s4 }
  0x1d   :  { %p221_p0 = por %p220_p13, %p219_p12 }
  0x1f   :  { %p222_p1 = pnand %p221_p0, %p215_p11 }
  0x21   :  { %225 = shalt.err (!%p222_p1)
}
  0x22   :  { %33 = dma.hbm_to_vmem [thread:$0]  %s315_s1, 448, %s28_s24, [#allocation6], %s255_s19, %s255_s19, %s256_s20  }
  0x23   :  { %248 = dma.done.wait [#allocation3], 128  }
  0x24   :  { %249 = vsyncadd [#allocation3], 4294967168 }
  0x25   :  { %250 = dma.done.wait [#allocation6], 448  }
  0x26   :  { %251 = vsyncadd [#allocation6], 4294966848  ;;  %v258_v0 = vmov 0.0   ;;  %vm259_vm0 = vmmov 0   ;;  %v177_v1 = vld [vmem:[#allocation5] sm:$0xff]   ;;  %v178_v2 = vld [vmem:[#allocation5 + $0x8] sm:$0xff]  }
  0x27   :  { %156 = vmatprep.subr.bf16.mxu0 %v258_v0  ;;  %164 = vmatprep.mubr.msk.bf16.mxu0 %vm259_vm0, %v258_v0  ;;  %v179_v3 = vld [vmem:[#allocation5 + $0x10] sm:$0xff]   ;;  %v180_v4 = vld [vmem:[#allocation5 + $0x18] ss:$0 sps:$4 sm:$0x77]   ;;  %vm80_vm1 = vcmask 1042432   ;;  %vm76_vm2 = vcmask 441344  }
  0x28   :  { %157 = vmatpush3.bf16.msra.mxu0 %v177_v1  ;;  %v82_v5 = vsel %vm80_vm1, %v180_v4, 0  ;;  %v181_v6 = vld [vmem:[#allocation2] sm:$0xff]   ;;  %s260_s1 = smov [#allocation7]  }
  0x29   :  { %158 = vmatprep.subr.bf16.mxu0 %v258_v0  ;;  %s132_s6 = sshll.u32 %s260_s1, 4  ;;  %s133_s6 = int_to_ptr.vmem [resolvable:$true] %s132_s6 }
  0x2a   :  { %s226_s7 = scalar_lea.vmem %s133_s6, 256  ;;  %p231_p3 = scmp.lt.s32.totalorder %s133_s6, %s133_s6 }
  0x2b   :  { %p227_p2 = scmp.ne.s32.totalorder %s133_s6, %s226_s7  ;;  %p232_p4 = scmp.lt.s32.totalorder %s226_s7, %s226_s7 }
  0x2c   :  { %159 = vmatpush3.bf16.msra.mxu0 %v178_v2 }
  0x2d   :  { %160 = vmatprep.subr.bf16.mxu0 %v258_v0  ;;  %p233_p5 = por %p232_p4, %p231_p3 }
  0x2f   :  { %p234_p6 = pnand %p233_p5, %p227_p2 }
  0x30   :  { %161 = vmatpush3.bf16.msra.mxu0 %v179_v3 }
  0x31   :  { %162 = vmatprep.subr.bf16.mxu0 %v258_v0 }
  0x34   :  { %163 = vmatpush3.bf16.msra.mxu0 %v82_v5 }
  0x37   :  { %165 = vmatmul.mubr.msk.bf16.vlgmr.msra.gmra.mrb[0].mxu0 %vm76_vm2, %v181_v6 }
 0x10a   :  { %v118_v7 = vpop.f32.mrb[0].mxu0 }
 0x10b   :  { %125 = vst [vmem:[#allocation7] sm:$0xff] %v118_v7  ;;  %v166_v8 = vpop.f32.mrb[1].mxu0 }
 0x10c   :  { %v121_v9 = vpop.f32.mrb[2].mxu0 }
 0x10d   :  { %126 = vst [vmem:[#allocation7 + $0x8] sm:$0xff] %v121_v9  ;;  %v167_v10 = vpop.f32.mrb[3].mxu0 }
 0x10e   :  { %237 = shalt.err (!%p234_p6)
}
 0x10f   :  { %s238_s10 = scalar_lea.hbm %s316_s2, 256 }
 0x110   :  { %p239_p7 = scmp.ne.s32.totalorder %s316_s2, %s238_s10  ;;  %p242_p8 = scmp.lt.u32.totalorder %s238_s10, %s316_s2 }
 0x112   :  { %p244_p9 = pnand %p242_p8, %p239_p7 }
 0x114   :  { %247 = shalt.err (!%p244_p9)
}
 0x115   :  { %s261_s15 = smov 128   ;;  %s262_s16 = smov 8  }
 0x116   :  { %138 = dma.vmem_to_hbm [thread:$0]  %s133_s6, 256, %s316_s2, [#allocation4], %s261_s15, %s261_s15, %s262_s16  }
 0x117   :  { %252 = dma.done.wait [#allocation4], 256  }
 0x118   :  { %253 = vsyncadd [#allocation4], 4294967040 }
 0x119   :  { %142 = vsyncpa [#allocation3], 1 }
 0x11a   :  { %143 = vsyncpa [#allocation6], 1 }
 0x11b   :  { %144 = vsyncpa [#allocation4], 1 }

</bundles_post_ra>
